<compile_context>
chip_gen: v7x
topology: tpu7x:2x2x1
jax: 0.10.0
libtpu: 0.0.40
codegen_flags: <defaults>
</compile_context>

<pallas_src>
import functools
import math

import jax
import jax.numpy as jnp
from jax.experimental import pallas as pl
from jax.experimental.pallas import tpu as pltpu


# Total per-grid-step VMEM footprint budget: (input + output) blocks, double
# buffered, plus f32 temporaries.  Conservative for v5e/v6e/v7x defaults.
_VMEM_BUDGET = 6 << 20          # 6 MiB
_MIN_MULTISTEP_BYTES = 512 << 10  # force >= 2 grid steps above this (v7x megacore)


def _round_up(x, m):
    return ((x + m - 1) // m) * m


# ----------------------------------------------------------------------------
# Kernels
# ----------------------------------------------------------------------------
def _ln_channels_first_kernel(x_ref, w_ref, b_ref, o_ref, *, eps):
    # Block: (BB, C, TL) -- channels on the sublane axis, flattened spatial on
    # the 128-lane axis.  Reduce over channels (axis=1, XLU; free filler here).
    x = x_ref[...].astype(jnp.float32)
    u = jnp.mean(x, axis=1, keepdims=True)
    xc = x - u
    var = jnp.mean(xc * xc, axis=1, keepdims=True)       # two-pass variance
    inv = jax.lax.rsqrt(var + eps)                        # EUP rsqrt
    o_ref[...] = (w_ref[...] * (xc * inv) + b_ref[...]).astype(o_ref.dtype)


def _ln_channels_last_kernel(x_ref, w_ref, b_ref, o_ref, *, eps):
    # Block: (TR, C); reduce over the trailing (lane) axis.
    x = x_ref[...].astype(jnp.float32)
    u = jnp.mean(x, axis=-1, keepdims=True)
    xc = x - u
    var = jnp.mean(xc * xc, axis=-1, keepdims=True)
    inv = jax.lax.rsqrt(var + eps)
    o_ref[...] = (xc * inv * w_ref[...] + b_ref[...]).astype(o_ref.dtype)


def _ln_channels_last_packed_kernel(x_ref, w_ref, b_ref, m_ref, o_ref, *,
                                    eps, inv_c):
    # Lane-packed small-C path.  Block: (TR2, P) with P = g*C (a multiple of
    # 128); g original rows share one 128-lane row.  m_ref is a (P, P)
    # block-diagonal ones matrix: x @ m leaves each original row's segment sum
    # broadcast in place across its C lanes (one MXU matmul per reduction).
    x = x_ref[...].astype(jnp.float32)
    m = m_ref[...]
    u = jnp.dot(x, m, preferred_element_type=jnp.float32) * inv_c
    xc = x - u
    var = jnp.dot(xc * xc, m, preferred_element_type=jnp.float32) * inv_c
    inv = jax.lax.rsqrt(var + eps)
    o_ref[...] = (xc * inv * w_ref[...] + b_ref[...]).astype(o_ref.dtype)


# ----------------------------------------------------------------------------
# Wrappers
# ----------------------------------------------------------------------------
def layer_norm_channels_first(x, weight, bias, eps=1e-6):
    """x: (B, C, H, W); normalize over C; weight/bias: (C,)."""
    B, C, H, W = x.shape
    HW = H * W
    x2 = x.reshape(B, C, HW)
    itemsize = jnp.dtype(x.dtype).itemsize

    # Lane tile: always a 128-multiple (ragged tail masked by Pallas), capped
    # in the 512-2048 sweet spot and by the VMEM bytes budget (C is resident).
    per_lane = C * (4 * itemsize + 4)      # in+out x2 buffers + f32 temporaries
    tl_cap = max(128, ((_VMEM_BUDGET // max(per_lane, 1)) // 128) * 128)
    TL = min(2048, _round_up(HW, 128), tl_cap)
    n_sp = pl.cdiv(HW, TL)

    # Fold batch elements into the block under the same bytes budget.
    per_b = C * TL * (4 * itemsize + 4)
    BB = max(1, min(B, _VMEM_BUDGET // max(per_b, 1)))

    # v7x megacore: keep >= 2 grid steps for non-trivial tensors.
    total_bytes = B * C * HW * itemsize
    if n_sp == 1 and B > 1 and total_bytes > _MIN_MULTISTEP_BYTES:
        BB = min(BB, pl.cdiv(B, 2))
    n_b = pl.cdiv(B, BB)

    w3 = weight.reshape(1, C, 1).astype(jnp.float32)
    b3 = bias.reshape(1, C, 1).astype(jnp.float32)

    kernel = functools.partial(_ln_channels_first_kernel, eps=float(eps))
    out = pl.pallas_call(
        kernel,
        out_shape=jax.ShapeDtypeStruct((B, C, HW), x.dtype),
        grid=(n_b, n_sp),
        in_specs=[
            pl.BlockSpec((BB, C, TL), lambda i, j: (i, 0, j)),
            pl.BlockSpec((1, C, 1), lambda i, j: (0, 0, 0)),   # grid-invariant
            pl.BlockSpec((1, C, 1), lambda i, j: (0, 0, 0)),   # grid-invariant
        ],
        out_specs=pl.BlockSpec((BB, C, TL), lambda i, j: (i, 0, j)),
        compiler_params=pltpu.CompilerParams(
            dimension_semantics=("parallel", "parallel")),     # megacore
    )(x2, w3, b3)
    return out.reshape(B, C, H, W)


def layer_norm_channels_last(x, weight, bias, eps=1e-6):
    """x: (..., C); normalize over the trailing axis; weight/bias: (C,)."""
    orig_shape = x.shape
    C = orig_shape[-1]
    R = int(math.prod(orig_shape[:-1])) if len(orig_shape) > 1 else 1
    x2 = x.reshape(R, C)
    itemsize = jnp.dtype(x.dtype).itemsize
    total_bytes = R * C * itemsize
    eps = float(eps)

    use_packed = (C < 128) and (128 % C == 0) and (R % (128 // C) == 0)

    if use_packed:
        # Lane-pack g rows per 128-lane row: (R, C) -> (R//g, g*C) is a free
        # contiguous reshape; stores become fully lane-dense.
        g = 128 // C
        P = g * C                                   # == 128
        R2 = R // g
        x3 = x2.reshape(R2, P)

        per_row = P * (4 * itemsize + 12)           # + two matmul f32 results
        TR2 = max(1, _VMEM_BUDGET // max(per_row, 1))
        if TR2 >= R2:
            TR2 = R2
            if total_bytes > _MIN_MULTISTEP_BYTES and R2 >= 16:
                TR2 = min(R2, _round_up(pl.cdiv(R2, 2), 8))   # v7x: >= 2 steps
        else:
            TR2 = max(8, (TR2 // 8) * 8)
        n_r = pl.cdiv(R2, TR2)

        lane = jnp.arange(P)
        m = (lane[:, None] // C == lane[None, :] // C).astype(jnp.float32)
        w2 = jnp.tile(weight.astype(jnp.float32), g).reshape(1, P)
        b2 = jnp.tile(bias.astype(jnp.float32), g).reshape(1, P)

        kernel = functools.partial(_ln_channels_last_packed_kernel,
                                   eps=eps, inv_c=1.0 / C)
        out = pl.pallas_call(
            kernel,
            out_shape=jax.ShapeDtypeStruct((R2, P), x.dtype),
            grid=(n_r,),
            in_specs=[
                pl.BlockSpec((TR2, P), lambda i: (i, 0)),
                pl.BlockSpec((1, P), lambda i: (0, 0)),        # grid-invariant
                pl.BlockSpec((1, P), lambda i: (0, 0)),        # grid-invariant
                pl.BlockSpec((P, P), lambda i: (0, 0)),        # ones matrix
            ],
            out_specs=pl.BlockSpec((TR2, P), lambda i: (i, 0)),
            compiler_params=pltpu.CompilerParams(
                dimension_semantics=("parallel",)),
        )(x3, w2, b2, m)
        return out.reshape(orig_shape)

    # Standard layout: rows on sublanes, C on lanes (lane-dense for C % 128 == 0).
    per_row = C * (4 * itemsize + 4)
    TR = max(1, _VMEM_BUDGET // max(per_row, 1))
    if TR >= R:
        TR = R
        if total_bytes > _MIN_MULTISTEP_BYTES and R >= 16:
            TR = min(R, _round_up(pl.cdiv(R, 2), 8))           # v7x: >= 2 steps
    else:
        TR = max(8, (TR // 8) * 8)
    n_r = pl.cdiv(R, TR)

    w2 = weight.reshape(1, C).astype(jnp.float32)
    b2 = bias.reshape(1, C).astype(jnp.float32)

    kernel = functools.partial(_ln_channels_last_kernel, eps=eps)
    out = pl.pallas_call(
        kernel,
        out_shape=jax.ShapeDtypeStruct((R, C), x.dtype),
        grid=(n_r,),
        in_specs=[
            pl.BlockSpec((TR, C), lambda i: (i, 0)),
            pl.BlockSpec((1, C), lambda i: (0, 0)),            # grid-invariant
            pl.BlockSpec((1, C), lambda i: (0, 0)),            # grid-invariant
        ],
        out_specs=pl.BlockSpec((TR, C), lambda i: (i, 0)),
        compiler_params=pltpu.CompilerParams(
            dimension_semantics=("parallel",)),
    )(x2, w2, b2)
    return out.reshape(orig_shape)


def layer_norm(x, weight, bias, eps=1e-6, data_format="channels_last"):
    """Mirror of the PyTorch module's forward."""
    if data_format == "channels_last":
        return layer_norm_channels_last(x, weight, bias, eps)
    elif data_format == "channels_first":
        return layer_norm_channels_first(x, weight, bias, eps)
    raise NotImplementedError(data_format)


# ----------------------------------------------------------------------------
# Pure-JAX references (match the PyTorch forward exactly)
# ----------------------------------------------------------------------------
def _ref_channels_first(x, w, b, eps):
    u = jnp.mean(x, axis=1, keepdims=True)
    s = jnp.mean((x - u) ** 2, axis=1, keepdims=True)
    xn = (x - u) / jnp.sqrt(s + eps)
    return w[None, :, None, None] * xn + b[None, :, None, None]


def _ref_channels_last(x, w, b, eps):
    u = jnp.mean(x, axis=-1, keepdims=True)
    s = jnp.mean((x - u) ** 2, axis=-1, keepdims=True)
    return (x - u) / jnp.sqrt(s + eps) * w + b


if __name__ == "__main__":
    key = jax.random.PRNGKey(0)
    k1, k2 = jax.random.split(key)
    eps = 1e-6  # module default

    # ---- channels_first (ConvNeXt / EGE-UNet style): NCHW, normalize over C ----
    B, C, H, W = 2, 4, 16, 16
    x_cf = jax.random.normal(k1, (B, C, H, W), jnp.float32)
    w_cf = jnp.linspace(0.5, 1.5, C, dtype=jnp.float32)
    b_cf = jnp.linspace(-0.1, 0.1, C, dtype=jnp.float32)
    y_cf = jax.block_until_ready(
        layer_norm(x_cf, w_cf, b_cf, eps, data_format="channels_first"))
    ref_cf = _ref_channels_first(x_cf, w_cf, b_cf, eps)
    assert y_cf.shape == x_cf.shape
    assert bool(jnp.all(jnp.isfinite(y_cf)))
    assert bool(jnp.allclose(y_cf, ref_cf, atol=1e-4, rtol=1e-4))

    # ---- channels_last: normalize over the trailing hidden dim ----
    Bs, S, D = 2, 8, 32
    x_cl = jax.random.normal(k2, (Bs, S, D), jnp.float32)
    w_cl = jnp.linspace(0.5, 1.5, D, dtype=jnp.float32)
    b_cl = jnp.linspace(-0.1, 0.1, D, dtype=jnp.float32)
    y_cl = jax.block_until_ready(
        layer_norm(x_cl, w_cl, b_cl, eps, data_format="channels_last"))
    ref_cl = _ref_channels_last(x_cl, w_cl, b_cl, eps)
    assert y_cl.shape == x_cl.shape
    assert bool(jnp.all(jnp.isfinite(y_cl)))
    assert bool(jnp.allclose(y_cl, ref_cl, atol=1e-4, rtol=1e-4))

    print("KERNEL_OK")
</pallas_src>

<mosaic_0001>
module attributes {stable_mosaic.version = 11 : i64} {
  func.func @_ln_channels_first_kernel(%arg0: i32, %arg1: i32, %arg2: memref<2x4x256xf32, #tpu.memory_space<vmem>>, %arg3: memref<1x4x1xf32, #tpu.memory_space<vmem>>, %arg4: memref<1x4x1xf32, #tpu.memory_space<vmem>>, %arg5: memref<2x4x256xf32, #tpu.memory_space<vmem>>) attributes {dimension_semantics = [#tpu.dimension_semantics<parallel>, #tpu.dimension_semantics<parallel>], iteration_bounds = array<i64: 1, 1>, scalar_prefetch = 0 : i64, scratch_operands = 0 : i64, tpu.core_type = #tpu.core_type<tc>, window_params = [{transform_indices = @transform_0, window_bounds = array<i64: 2, 4, 256>}, {pipeline_mode = #tpu.pipeline_mode<synchronous>, transform_indices = @transform_1, window_bounds = array<i64: 1, 4, 1>}, {pipeline_mode = #tpu.pipeline_mode<synchronous>, transform_indices = @transform_2, window_bounds = array<i64: 1, 4, 1>}, {transform_indices = @transform_3, window_bounds = array<i64: 2, 4, 256>}]} {
    %c0 = arith.constant 0 : index
    %c0_0 = arith.constant 0 : index
    %c0_1 = arith.constant 0 : index
    %0 = vector.load %arg2[%c0, %c0_0, %c0_1] : memref<2x4x256xf32, #tpu.memory_space<vmem>>, vector<2x4x256xf32>
    %cst = arith.constant dense<0.000000e+00> : vector<2x256xf32>
    %1 = vector.multi_reduction <add>, %0, %cst [1] : vector<2x4x256xf32> to vector<2x256xf32>
    %2 = vector.shape_cast %1 : vector<2x256xf32> to vector<2x1x256xf32>
    %cst_2 = arith.constant 4.000000e+00 : f32
    %3 = vector.broadcast %cst_2 : f32 to vector<2x1x256xf32>
    %4 = arith.divf %2, %3 : vector<2x1x256xf32>
    %5 = vector.broadcast %4 : vector<2x1x256xf32> to vector<2x4x256xf32>
    %6 = arith.subf %0, %5 : vector<2x4x256xf32>
    %7 = arith.mulf %6, %6 : vector<2x4x256xf32>
    %cst_3 = arith.constant dense<0.000000e+00> : vector<2x256xf32>
    %8 = vector.multi_reduction <add>, %7, %cst_3 [1] : vector<2x4x256xf32> to vector<2x256xf32>
    %9 = vector.shape_cast %8 : vector<2x256xf32> to vector<2x1x256xf32>
    %cst_4 = arith.constant 4.000000e+00 : f32
    %10 = vector.broadcast %cst_4 : f32 to vector<2x1x256xf32>
    %11 = arith.divf %9, %10 : vector<2x1x256xf32>
    %cst_5 = arith.constant 9.99999997E-7 : f32
    %12 = vector.broadcast %cst_5 : f32 to vector<2x1x256xf32>
    %13 = arith.addf %11, %12 : vector<2x1x256xf32>
    %14 = math.rsqrt %13 : vector<2x1x256xf32>
    %c0_6 = arith.constant 0 : index
    %c0_7 = arith.constant 0 : index
    %c0_8 = arith.constant 0 : index
    %15 = vector.load %arg3[%c0_6, %c0_7, %c0_8] : memref<1x4x1xf32, #tpu.memory_space<vmem>>, vector<1x4x1xf32>
    %16 = vector.broadcast %14 : vector<2x1x256xf32> to vector<2x4x256xf32>
    %17 = arith.mulf %6, %16 : vector<2x4x256xf32>
    %18 = vector.broadcast %15 : vector<1x4x1xf32> to vector<2x4x256xf32>
    %19 = arith.mulf %18, %17 : vector<2x4x256xf32>
    %c0_9 = arith.constant 0 : index
    %c0_10 = arith.constant 0 : index
    %c0_11 = arith.constant 0 : index
    %20 = vector.load %arg4[%c0_9, %c0_10, %c0_11] : memref<1x4x1xf32, #tpu.memory_space<vmem>>, vector<1x4x1xf32>
    %21 = vector.broadcast %20 : vector<1x4x1xf32> to vector<2x4x256xf32>
    %22 = arith.addf %19, %21 : vector<2x4x256xf32>
    %c0_12 = arith.constant 0 : index
    %c0_13 = arith.constant 0 : index
    %c0_14 = arith.constant 0 : index
    %23 = vector.load %arg5[%c0_12, %c0_13, %c0_14] : memref<2x4x256xf32, #tpu.memory_space<vmem>>, vector<2x4x256xf32>
    tpu.vector_store %arg5[%c0_12, %c0_13, %c0_14], %22 {strides = array<i32>} : memref<2x4x256xf32, #tpu.memory_space<vmem>>, vector<2x4x256xf32>,
    return
  }
  func.func @transform_0(%arg0: i32, %arg1: i32) -> (i32, i32, i32) {
    %c0_i32 = arith.constant 0 : i32
    %c0_i32_0 = arith.constant 0 : i32
    return %arg0, %c0_i32, %arg1 : i32, i32, i32
  }
  func.func @transform_1(%arg0: i32, %arg1: i32) -> (i32, i32, i32) {
    %c0_i32 = arith.constant 0 : i32
    %c0_i32_0 = arith.constant 0 : i32
    %c0_i32_1 = arith.constant 0 : i32
    %c0_i32_2 = arith.constant 0 : i32
    return %c0_i32, %c0_i32_0, %c0_i32_1 : i32, i32, i32
  }
  func.func @transform_2(%arg0: i32, %arg1: i32) -> (i32, i32, i32) {
    %c0_i32 = arith.constant 0 : i32
    %c0_i32_0 = arith.constant 0 : i32
    %c0_i32_1 = arith.constant 0 : i32
    %c0_i32_2 = arith.constant 0 : i32
    return %c0_i32, %c0_i32_0, %c0_i32_1 : i32, i32, i32
  }
  func.func @transform_3(%arg0: i32, %arg1: i32) -> (i32, i32, i32) {
    %c0_i32 = arith.constant 0 : i32
    %c0_i32_0 = arith.constant 0 : i32
    return %arg0, %c0_i32, %arg1 : i32, i32, i32
  }
}

</mosaic_0001>

<bundles_post_ra>
// kernel: tpu_custom_call.1
= control target key start
LH: loop header
LB: loop body
LE: loop exit
PB: predicated region body
PF: predicated region fallthrough
CT: control target
= control target key end

     0   :  { %8 = vsyncpa [#allocation3], 0  ;;  %s325_s0 = inlined_call_operand.hbm [shape: f32[2,4,256], index: 0, kind: input, shape index: {}]   ;;  %s326_s1 = inlined_call_operand.vmem [shape: f32[1,4,1], index: 1, kind: input, shape index: {}]   ;;  %s327_s2 = inlined_call_operand.vmem [shape: f32[1,4,1], index: 2, kind: input, shape index: {}]   ;;  %s328_s3 = inlined_call_operand.hbm [shape: f32[2,4,256], index: 3, kind: output, shape index: {}]  }
   0x1   :  { %9 = vsyncpa [#allocation4], 0  ;;  %s256_s12 = smov [#allocation2]   ;;  %s208_s16 = scalar_lea.hbm %s325_s0, 256 }
   0x2   :  { %s15_s13 = sshll.u32 %s256_s12, 4  ;;  %p209_p0 = scmp.ne.s32.totalorder %s325_s0, %s208_s16  ;;  %s16_s13 = int_to_ptr.vmem [resolvable:$true] %s15_s13 }
   0x3   :  { %p212_p1 = scmp.lt.u32.totalorder %s208_s16, %s325_s0 }
   0x5   :  { %p214_p2 = pnand %p212_p1, %p209_p0 }
   0x7   :  { %217 = shalt.err (!%p214_p2)
}
   0x8   :  { %s218_s21 = scalar_lea.vmem %s16_s13, 256  ;;  %p223_p4 = scmp.lt.s32.totalorder %s16_s13, %s16_s13 }
   0x9   :  { %p219_p3 = scmp.ne.s32.totalorder %s16_s13, %s218_s21  ;;  %p224_p5 = scmp.lt.s32.totalorder %s218_s21, %s218_s21 }
   0xb   :  { %p225_p6 = por %p224_p5, %p223_p4 }
   0xd   :  { %p226_p7 = pnand %p225_p6, %p219_p3 }
   0xf   :  { %229 = shalt.err (!%p226_p7)
}
  0x10   :  { %s257_s22 = smov 128   ;;  %s258_s23 = smov 8  }
  0x11   :  { %21 = dma.hbm_to_vmem [thread:$0]  %s325_s0, 256, %s16_s13, [#allocation3], %s257_s22, %s257_s22, %s258_s23  }
  0x12   :  { %252 = dma.done.wait [#allocation3], 256  }
  0x13   :  { %253 = vsyncadd [#allocation3], 4294967040  ;;  %v259_v0 = vmov 0   ;;  %v129_v1 = vld [vmem:[%s326_s1] sm:$0xf]  ;;  %v30_v4 = vld [vmem:[#allocation2 + $0x8] sm:$0xff] }
  0x14   :  { %197 = vset.pattern.permute.xlu0 %v259_v0  ;;  %v155_v2 = vld [vmem:[%s327_s2] sm:$0xf]  ;;  %vm37_vm0 = vcmask 1043456   ;;  %v34_v6 = vcombine.high %v30_v4, %v30_v4  ;;  %s260_s0 = smov [#allocation5]  }
  0x15   :  { %142 = vperm.xlu0 %197, %v129_v1   ;;  %v29_v3 = vld [vmem:[#allocation2] sm:$0xff]  ;;  %v52_v9 = vsel %vm37_vm0, %v30_v4, 0.0  ;;  %s180_s1 = sshll.u32 %s260_s0, 4  ;;  %s181_s1 = int_to_ptr.vmem [resolvable:$true] %s180_s1 }
  0x16   :  { %v33_v5 = vcombine.high %v29_v3, %v29_v3  ;;  %v38_v7 = vsel %vm37_vm0, %v29_v3, 0.0  ;;  %v59_v10 = vsel %vm37_vm0, %v34_v6, 0.0  ;;  %v53_v13 = vrot.slane %v52_v9, 4  ;;  %s230_s2 = scalar_lea.vmem %s181_s1, 256  ;;  %p235_p9 = scmp.lt.s32.totalorder %s181_s1, %s181_s1 }
  0x17   :  { %v39_v11 = vrot.slane %v38_v7, 4  ;;  %v60_v14 = vrot.slane %v59_v10, 4  ;;  %p231_p8 = scmp.ne.s32.totalorder %s181_s1, %s230_s2  ;;  %p236_p10 = scmp.lt.s32.totalorder %s230_s2, %s230_s2 }
  0x18   :  { %v45_v8 = vsel %vm37_vm0, %v33_v5, 0.0  ;;  %v54_v17 = vadd.f32 %v53_v13, %v52_v9 }
  0x19   :  { %158 = vperm.xlu0 %197, %v155_v2   ;;  %v46_v12 = vrot.slane %v45_v8, 4  ;;  %v40_v15 = vadd.f32 %v39_v11, %v38_v7  ;;  %v61_v18 = vadd.f32 %v60_v14, %v59_v10  ;;  %p237_p11 = por %p236_p10, %p235_p9 }
  0x1a   :  { %v55_v21 = vrot.slane %v54_v17, 2 }
  0x1b   :  { %v47_v16 = vadd.f32 %v46_v12, %v45_v8  ;;  %v41_v19 = vrot.slane %v40_v15, 2  ;;  %v62_v22 = vrot.slane %v61_v18, 2  ;;  %p238_p12 = pnand %p237_p11, %p231_p8 }
  0x1c   :  { %v56_v25 = vadd.f32 %v55_v21, %v54_v17 }
  0x1d   :  { %v48_v20 = vrot.slane %v47_v16, 2  ;;  %v42_v23 = vadd.f32 %v41_v19, %v40_v15  ;;  %v63_v26 = vadd.f32 %v62_v22, %v61_v18 }
  0x1e   :  { %v57_v29 = vrot.slane %v56_v25, 1 }
  0x1f   :  { %v49_v24 = vadd.f32 %v48_v20, %v47_v16  ;;  %v43_v27 = vrot.slane %v42_v23, 1  ;;  %v64_v30 = vrot.slane %v63_v26, 1 }
  0x20   :  { %v58_v33 = vadd.f32 %v57_v29, %v56_v25 }
  0x21   :  { %v50_v28 = vrot.slane %v49_v24, 1  ;;  %v44_v31 = vadd.f32 %v43_v27, %v42_v23  ;;  %v65_v34 = vadd.f32 %v64_v30, %v63_v26 }
  0x22   :  { %v69_v37 = vmul.f32 0.25, %v58_v33 }
  0x23   :  { %v51_v32 = vadd.f32 %v50_v28, %v49_v24  ;;  %v67_v35 = vmul.f32 0.25, %v44_v31  ;;  %v70_v38 = vmul.f32 0.25, %v65_v34 }
  0x25   :  { %v68_v36 = vmul.f32 0.25, %v51_v32  ;;  %v76_v40 = vcombine.low %v69_v37, %v70_v38 }
  0x27   :  { %v75_v39 = vcombine.low %v67_v35, %v68_v36  ;;  %v80_v42 = vsub.f32 %v30_v4, %v76_v40 }
  0x29   :  { %v79_v41 = vsub.f32 %v29_v3, %v75_v39  ;;  %v82_v44 = vmul.f32 %v80_v42, %v80_v42 }
  0x2b   :  { %v81_v43 = vmul.f32 %v79_v41, %v79_v41  ;;  %v86_v46 = vcombine.high %v82_v44, %v82_v44  ;;  %v103_v48 = vsel %vm37_vm0, %v82_v44, 0.0 }
  0x2c   :  { %v104_v52 = vrot.slane %v103_v48, 4 }
  0x2d   :  { %v85_v45 = vcombine.high %v81_v43, %v81_v43  ;;  %v89_v47 = vsel %vm37_vm0, %v81_v43, 0.0  ;;  %v110_v51 = vsel %vm37_vm0, %v86_v46, 0.0 }
  0x2e   :  { %v90_v50 = vrot.slane %v89_v47, 4  ;;  %v111_v54 = vrot.slane %v110_v51, 4  ;;  %v105_v56 = vadd.f32 %v104_v52, %v103_v48 }
  0x2f   :  { %v96_v49 = vsel %vm37_vm0, %v85_v45, 0.0 }
  0x30   :  { %v97_v53 = vrot.slane %v96_v49, 4  ;;  %v91_v55 = vadd.f32 %v90_v50, %v89_v47  ;;  %v112_v58 = vadd.f32 %v111_v54, %v110_v51  ;;  %v106_v60 = vrot.slane %v105_v56, 2 }
  0x32   :  { %v98_v57 = vadd.f32 %v97_v53, %v96_v49  ;;  %v92_v59 = vrot.slane %v91_v55, 2  ;;  %v113_v62 = vrot.slane %v112_v58, 2  ;;  %v107_v0 = vadd.f32 %v106_v60, %v105_v56 }
  0x34   :  { %v99_v61 = vrot.slane %v98_v57, 2  ;;  %v93_v63 = vadd.f32 %v92_v59, %v91_v55  ;;  %v114_v2 = vadd.f32 %v113_v62, %v112_v58  ;;  %v108_v4 = vrot.slane %v107_v0, 1 }
  0x36   :  { %v100_v1 = vadd.f32 %v99_v61, %v98_v57  ;;  %v94_v3 = vrot.slane %v93_v63, 1  ;;  %v115_v6 = vrot.slane %v114_v2, 1  ;;  %v109_v8 = vadd.f32 %v108_v4, %v107_v0 }
  0x38   :  { %v101_v5 = vrot.slane %v100_v1, 1  ;;  %v95_v7 = vadd.f32 %v94_v3, %v93_v63  ;;  %v116_v10 = vadd.f32 %v115_v6, %v114_v2  ;;  %v119_v12 = vmul.f32 0.25, %v109_v8 }
  0x3a   :  { %v102_v9 = vadd.f32 %v101_v5, %v100_v1  ;;  %v117_v11 = vmul.f32 0.25, %v95_v7  ;;  %v120_v14 = vmul.f32 0.25, %v116_v10  ;;  %v123_v16 = vadd.f32 1e-06, %v119_v12 }
  0x3c   :  { %v118_v13 = vmul.f32 0.25, %v102_v9  ;;  %v121_v15 = vadd.f32 1e-06, %v117_v11  ;;  %v124_v18 = vadd.f32 1e-06, %v120_v14 }
  0x3e   :  { %v122_v17 = vadd.f32 1e-06, %v118_v13  ;;  %200 = vrsqrt.f32 %v121_v15 }
  0x3f   :  { %202 = vrsqrt.f32 %v123_v16 }
  0x40   :  { %204 = vrsqrt.f32 %v122_v17 }
  0x41   :  { %206 = vrsqrt.f32 %v124_v18 }
  0x48   :  { %v201_v19 = vpop.eup %200 }
  0x49   :  { %v203_v20 = vpop.eup %202 }
  0x4a   :  { %v205_v21 = vpop.eup %204 }
  0x4b   :  { %v207_v22 = vpop.eup %206  ;;  %v134_v23 = vcombine.low %v201_v19, %v205_v21 }
  0x4c   :  { %v135_v24 = vcombine.low %v203_v20, %v207_v22 }
  0x4d   :  { %v138_v25 = vmul.f32 %v134_v23, %v79_v41 }
  0x4e   :  { %v139_v26 = vmul.f32 %v135_v24, %v80_v42 }
  0x4f   :  { %v147_v27 = vcombine.high %v138_v25, %v138_v25 }
  0x50   :  { %v148_v28 = vcombine.high %v139_v26, %v139_v26 }
  0x94   :  { %v143_v29 = vpop.permute.xlu0 %142 }
  0x95   :  { %v151_v30 = vmul.f32 %v143_v29, %v138_v25  ;;  %v152_v31 = vmul.f32 %v147_v27, %v143_v29  ;;  %v153_v32 = vmul.f32 %v143_v29, %v139_v26  ;;  %v154_v33 = vmul.f32 %v148_v28, %v143_v29 }
  0x98   :  { %v159_v34 = vpop.permute.xlu0 %158 }
  0x99   :  { %v161_v35 = vadd.f32 %v159_v34, %v151_v30  ;;  %v162_v36 = vadd.f32 %v159_v34, %v152_v31  ;;  %v163_v37 = vadd.f32 %v159_v34, %v153_v32  ;;  %v164_v38 = vadd.f32 %v159_v34, %v154_v33 }
  0x9b   :  { %v169_v39 = vcombine.low %v161_v35, %v162_v36  ;;  %v170_v40 = vcombine.low %v163_v37, %v164_v38 }
  0x9d   :  { %173 = vst [vmem:[#allocation5] sm:$0xff] %v169_v39  ;;  %174 = vst [vmem:[#allocation5 + $0x8] sm:$0xff] %v170_v40 }
  0x9e   :  { %241 = shalt.err (!%p238_p12)
}
  0x9f   :  { %s242_s5 = scalar_lea.hbm %s328_s3, 256 }
  0xa0   :  { %p243_p13 = scmp.ne.s32.totalorder %s328_s3, %s242_s5  ;;  %p246_p0 = scmp.lt.u32.totalorder %s242_s5, %s328_s3 }
  0xa2   :  { %p248_p1 = pnand %p246_p0, %p243_p13 }
  0xa4   :  { %251 = shalt.err (!%p248_p1)
}
  0xa5   :  { %186 = dma.vmem_to_hbm [thread:$0]  %s181_s1, 256, %s328_s3, [#allocation4], %s257_s22, %s257_s22, %s258_s23  }
  0xa6   :  { %254 = dma.done.wait [#allocation4], 256  }
  0xa7   :  { %255 = vsyncadd [#allocation4], 4294967040 }
  0xa8   :  { %190 = vsyncpa [#allocation3], 1 }
  0xa9   :  { %191 = vsyncpa [#allocation4], 1 }

</bundles_post_ra>
